<compile_context>
chip_gen: v6e
topology: v6e:2x2x1
jax: 0.10.0
libtpu: 0.0.40
codegen_flags: <defaults>
</compile_context>

<pallas_src>
import jax
import jax.numpy as jnp
from jax.experimental import pallas as pl
from jax.experimental.pallas import tpu as pltpu


def _round_up(x, m):
    return (x + m - 1) // m * m


def _fc_softplus_kernel(x_ref, w_ref, b_ref, o_ref):
    # x_ref: (TM, K)   w_ref: (K, Np)   b_ref: (1, Np)   o_ref: (TM, Np)
    z = jnp.dot(x_ref[...], w_ref[...], preferred_element_type=jnp.float32)
    z = z + b_ref[...]
    # Softplus, numerically stable; matches torch default (beta=1, threshold=20).
    # (Two EUP ops/elem — acceptable here; the EUP slot only binds at much
    #  larger N than this layer ever sees.)
    sp = jnp.where(z > 20.0, z, jnp.log1p(jnp.exp(jnp.minimum(z, 20.0))))
    o_ref[...] = sp.astype(o_ref.dtype)


def prepare_fc_params(weight, bias, compute_dtype=jnp.float32):
    """One-time param prep (hoisted out of the forward path).

    weight: (out_features, in_features)  -- nn.Linear convention
    bias:   (out_features,)

    Returns (w_t_padded, bias_padded, out_features) where
      w_t_padded : (in_features, Np) with Np = round_up(out_features, 128),
                   pre-transposed, cast to compute_dtype, zero-padded columns.
      bias_padded: (1, Np) f32, zero-padded.
    """
    out_features, in_features = weight.shape
    n_pad = _round_up(out_features, 128)
    w_t = jnp.zeros((in_features, n_pad), compute_dtype)
    w_t = w_t.at[:, :out_features].set(weight.T.astype(compute_dtype))
    b2d = jnp.zeros((1, n_pad), jnp.float32)
    b2d = b2d.at[:, :out_features].set(bias.astype(jnp.float32))
    return w_t, b2d, out_features


def full_connection(x, w_t, b2d, out_features, *, block_rows=256):
    """Forward pass of FullConnection: softplus(flatten(x) @ W^T + b).

    x:   any shape (B, ...); flattened to (B, in_features) like input.view(-1, F)
    w_t: (in_features, Np) pre-transposed / padded weight from prepare_fc_params
    b2d: (1, Np) padded bias
    """
    B = x.shape[0]
    in_features = 1
    for s in x.shape[1:]:
        in_features *= s
    compute_dtype = w_t.dtype
    x2d = x.reshape(B, in_features).astype(compute_dtype)

    K, n_pad = w_t.shape
    assert K == in_features, "weight / input feature mismatch"

    # Row tile: multiple of 8 (f32 sublane), capped at block_rows so the
    # double-buffered (x tile + out tile) stays well under v7x's 64 MiB VMEM.
    tm = min(block_rows, _round_up(B, 8))
    b_pad = _round_up(B, tm)
    if b_pad != B:
        x2d = jnp.pad(x2d, ((0, b_pad - B), (0, 0)))

    grid = (b_pad // tm,)
    out = pl.pallas_call(
        _fc_softplus_kernel,
        out_shape=jax.ShapeDtypeStruct((b_pad, n_pad), jnp.float32),
        grid_spec=pltpu.PrefetchScalarGridSpec(
            num_scalar_prefetch=0,
            grid=grid,
            in_specs=[
                pl.BlockSpec((tm, K), lambda i: (i, 0)),       # row-tiled activations
                pl.BlockSpec((K, n_pad), lambda i: (0, 0)),    # whole weight, resident
                pl.BlockSpec((1, n_pad), lambda i: (0, 0)),    # bias, resident
            ],
            out_specs=pl.BlockSpec((tm, n_pad), lambda i: (i, 0)),
        ),
        compiler_params=pltpu.CompilerParams(
            dimension_semantics=("parallel",)),
    )(x2d, w_t, b2d)

    # Slice off row padding and the zero-padded output columns.
    return out[:B, :out_features]


def init_full_connection_params(key, in_features, out_features):
    """Deterministic nn.Linear-style init: U(-1/sqrt(in), 1/sqrt(in))."""
    kw, kb = jax.random.split(key)
    bound = 1.0 / (in_features ** 0.5)
    weight = jax.random.uniform(kw, (out_features, in_features),
                                minval=-bound, maxval=bound, dtype=jnp.float32)
    bias = jax.random.uniform(kb, (out_features,),
                              minval=-bound, maxval=bound, dtype=jnp.float32)
    return weight, bias


if __name__ == "__main__":
    key = jax.random.PRNGKey(0)
    k_x, k_p, k_x2, k_p2 = jax.random.split(key, 4)

    # --- Test 1: small shape matching fc2 of CrystalGraphConvNet (32 -> 32-ish),
    #             f32 compute, strict check. ---
    batch, in_features, out_features = 8, 32, 16
    x = jax.random.normal(k_x, (batch, in_features), dtype=jnp.float32)
    weight, bias = init_full_connection_params(k_p, in_features, out_features)

    w_t, b2d, n_out = prepare_fc_params(weight, bias, compute_dtype=jnp.float32)
    out = full_connection(x, w_t, b2d, n_out)
    out = jax.block_until_ready(out)

    ref = jax.nn.softplus(x @ weight.T + bias)
    assert out.shape == (batch, out_features)
    assert jnp.allclose(out, ref, atol=1e-5, rtol=1e-5)

    # --- Test 2: non-8-aligned batch + multi-step row grid (exercises row
    #             padding and "parallel" tiling), fc1-like K = 16*7*18 = 2016. ---
    batch2, in_features2, out_features2 = 40, 16 * 7 * 18, 32
    x2 = jax.random.normal(k_x2, (batch2, 16, 7, 18), dtype=jnp.float32)
    weight2, bias2 = init_full_connection_params(k_p2, in_features2, out_features2)

    w_t2, b2d2, n_out2 = prepare_fc_params(weight2, bias2, compute_dtype=jnp.float32)
    out2 = full_connection(x2, w_t2, b2d2, n_out2, block_rows=16)  # grid=(3,)
    out2 = jax.block_until_ready(out2)

    ref2 = jax.nn.softplus(x2.reshape(batch2, in_features2) @ weight2.T + bias2)
    assert out2.shape == (batch2, out_features2)
    assert jnp.allclose(out2, ref2, atol=1e-4, rtol=1e-4)

    # --- Test 3: bf16 MXU operands (native MXU path on v6e/v7x), f32 accum,
    #             looser tolerance. ---
    w_t_bf, b2d_bf, n_out_bf = prepare_fc_params(weight2, bias2,
                                                 compute_dtype=jnp.bfloat16)
    out_bf = full_connection(x2, w_t_bf, b2d_bf, n_out_bf, block_rows=16)
    out_bf = jax.block_until_ready(out_bf)
    assert out_bf.shape == (batch2, out_features2)
    assert jnp.allclose(out_bf, ref2, atol=5e-2, rtol=5e-2)

    print("KERNEL_OK")
</pallas_src>

<mosaic_0001>
module attributes {stable_mosaic.version = 11 : i64} {
  func.func @_fc_softplus_kernel(%arg0: i32, %arg1: memref<8x32xf32, #tpu.memory_space<vmem>>, %arg2: memref<32x128xf32, #tpu.memory_space<vmem>>, %arg3: memref<1x128xf32, #tpu.memory_space<vmem>>, %arg4: memref<8x128xf32, #tpu.memory_space<vmem>>) attributes {dimension_semantics = [#tpu.dimension_semantics<parallel>], iteration_bounds = array<i64: 1>, scalar_prefetch = 0 : i64, scratch_operands = 0 : i64, tpu.core_type = #tpu.core_type<tc>, window_params = [{transform_indices = @transform_0, window_bounds = array<i64: 8, 32>}, {pipeline_mode = #tpu.pipeline_mode<synchronous>, transform_indices = @transform_1, window_bounds = array<i64: 32, 128>}, {pipeline_mode = #tpu.pipeline_mode<synchronous>, transform_indices = @transform_2, window_bounds = array<i64: 1, 128>}, {transform_indices = @transform_3, window_bounds = array<i64: 8, 128>}]} {
    %c0 = arith.constant 0 : index
    %c0_0 = arith.constant 0 : index
    %0 = vector.load %arg1[%c0, %c0_0] : memref<8x32xf32, #tpu.memory_space<vmem>>, vector<8x32xf32>
    %c0_1 = arith.constant 0 : index
    %c0_2 = arith.constant 0 : index
    %1 = vector.load %arg2[%c0_1, %c0_2] : memref<32x128xf32, #tpu.memory_space<vmem>>, vector<32x128xf32>
    %cst = arith.constant dense<0.000000e+00> : vector<8x128xf32>
    %2 = tpu.matmul %0, %1, %cst {dimension_numbers = #tpu.dot_dimension_numbers<[1], [0], [0], [1], [0, 0, 1, 1], [], []>} : vector<8x32xf32>, vector<32x128xf32>, vector<8x128xf32> -> vector<8x128xf32>
    %c0_3 = arith.constant 0 : index
    %c0_4 = arith.constant 0 : index
    %3 = vector.load %arg3[%c0_3, %c0_4] : memref<1x128xf32, #tpu.memory_space<vmem>>, vector<1x128xf32>
    %4 = vector.broadcast %3 : vector<1x128xf32> to vector<8x128xf32>
    %5 = arith.addf %2, %4 : vector<8x128xf32>
    %cst_5 = arith.constant 2.000000e+01 : f32
    %6 = vector.broadcast %cst_5 : f32 to vector<8x128xf32>
    %7 = arith.cmpf ogt, %5, %6 : vector<8x128xf32>
    %cst_6 = arith.constant 2.000000e+01 : f32
    %8 = vector.broadcast %cst_6 : f32 to vector<8x128xf32>
    %9 = arith.minimumf %5, %8 : vector<8x128xf32>
    %10 = math.exp %9 : vector<8x128xf32>
    %11 = math.log1p %10 : vector<8x128xf32>
    %12 = arith.select %7, %5, %11 : vector<8x128xi1>, vector<8x128xf32>
    %c0_7 = arith.constant 0 : index
    %c0_8 = arith.constant 0 : index
    %13 = vector.load %arg4[%c0_7, %c0_8] : memref<8x128xf32, #tpu.memory_space<vmem>>, vector<8x128xf32>
    tpu.vector_store %arg4[%c0_7, %c0_8], %12 {strides = array<i32>} : memref<8x128xf32, #tpu.memory_space<vmem>>, vector<8x128xf32>,
    return
  }
  func.func @transform_0(%arg0: i32) -> (i32, i32) {
    %c0_i32 = arith.constant 0 : i32
    %c0_i32_0 = arith.constant 0 : i32
    return %arg0, %c0_i32 : i32, i32
  }
  func.func @transform_1(%arg0: i32) -> (i32, i32) {
    %c0_i32 = arith.constant 0 : i32
    %c0_i32_0 = arith.constant 0 : i32
    %c0_i32_1 = arith.constant 0 : i32
    return %c0_i32, %c0_i32_0 : i32, i32
  }
  func.func @transform_2(%arg0: i32) -> (i32, i32) {
    %c0_i32 = arith.constant 0 : i32
    %c0_i32_0 = arith.constant 0 : i32
    %c0_i32_1 = arith.constant 0 : i32
    return %c0_i32, %c0_i32_0 : i32, i32
  }
  func.func @transform_3(%arg0: i32) -> (i32, i32) {
    %c0_i32 = arith.constant 0 : i32
    %c0_i32_0 = arith.constant 0 : i32
    return %arg0, %c0_i32 : i32, i32
  }
}

</mosaic_0001>

<bundles_post_ra>
// kernel: tpu_custom_call.1
= control target key start
LH: loop header
LB: loop body
LE: loop exit
PB: predicated region body
PF: predicated region fallthrough
CT: control target
= control target key end

     0   :  { %8 = vsyncpa [#allocation3], 0  ;;  %s292_s0 = inlined_call_operand.hbm [shape: f32[8,32], index: 0, kind: input, shape index: {}]   ;;  %s293_s1 = inlined_call_operand.hbm [shape: f32[32,128], index: 1, kind: input, shape index: {}]   ;;  %s294_s2 = inlined_call_operand.vmem [shape: f32[1,128], index: 2, kind: input, shape index: {}]   ;;  %s295_s3 = inlined_call_operand.hbm [shape: f32[8,128], index: 3, kind: output, shape index: {}]  }
   0x1   :  { %9 = vsyncpa [#allocation6], 0 }
   0x2   :  { %10 = vsyncpa [#allocation4], 0  ;;  %s253_s12 = smov [#allocation2]   ;;  %s254_s14 = smov [#allocation5]  }
   0x3   :  { %s17_s13 = sshll.u32 %s253_s12, 4  ;;  %s26_s15 = sshll.u32 %s254_s14, 4  ;;  %s18_s13 = int_to_ptr.vmem [resolvable:$true] %s17_s13  ;;  %s27_s15 = int_to_ptr.vmem [resolvable:$true] %s26_s15 }
   0x4   :  { %s195_s16 = scalar_lea.vmem %s18_s13, 128  ;;  %p200_p1 = scmp.lt.s32.totalorder %s18_s13, %s18_s13 }
   0x5   :  { %p196_p0 = scmp.ne.s32.totalorder %s18_s13, %s195_s16  ;;  %p201_p2 = scmp.lt.s32.totalorder %s195_s16, %s195_s16 }
   0x7   :  { %p202_p3 = por %p201_p2, %p200_p1 }
   0x9   :  { %p203_p4 = pnand %p202_p3, %p196_p0 }
   0xb   :  { %206 = shalt.err (!%p203_p4)
}
   0xc   :  { %20 = dma.hbm_to_vmem [thread:$0]  %s292_s0, 128, %s18_s13, [#allocation3]  }
   0xd   :  { %s215_s19 = scalar_lea.vmem %s27_s15, 512  ;;  %p220_p6 = scmp.lt.s32.totalorder %s27_s15, %s27_s15 }
   0xe   :  { %p216_p5 = scmp.ne.s32.totalorder %s27_s15, %s215_s19  ;;  %p221_p7 = scmp.lt.s32.totalorder %s215_s19, %s215_s19 }
  0x10   :  { %p222_p8 = por %p221_p7, %p220_p6 }
  0x12   :  { %p223_p9 = pnand %p222_p8, %p216_p5 }
  0x14   :  { %226 = shalt.err (!%p223_p9)
}
  0x15   :  { %s255_s20 = smov 128   ;;  %s256_s21 = smov 8  }
  0x16   :  { %32 = dma.hbm_to_vmem [thread:$0]  %s293_s1, 512, %s27_s15, [#allocation6], %s255_s20, %s255_s20, %s256_s21  }
  0x17   :  { %247 = dma.done.wait [#allocation3], 128  }
  0x18   :  { %248 = vsyncadd [#allocation3], 4294967168 }
  0x19   :  { %249 = dma.done.wait [#allocation6], 512  }
  0x1a   :  { %250 = vsyncadd [#allocation6], 4294966784  ;;  %v257_v0 = vmov 0.0   ;;  %vm258_vm0 = vmmov 0   ;;  %v45_v1 = vld [vmem:[#allocation5 + $0x18] sm:$0xff]  ;;  %v44_v2 = vld [vmem:[#allocation5 + $0x10] sm:$0xff] }
  0x1b   :  { %165 = vmatprep.subr.mxu0 %v257_v0  ;;  %173 = vmatprep.mubr.msk.f32.mxu0 %vm258_vm0, %v257_v0  ;;  %v43_v3 = vld [vmem:[#allocation5 + $0x8] sm:$0xff]  ;;  %v42_v4 = vld [vmem:[#allocation5] sm:$0xff]  ;;  %v41_v5 = vld [vmem:[#allocation2] sm:$0xff]  ;;  %vm53_vm1 = vcmask 261120   ;;  %s259_s24 = smov [#allocation7]  }
  0x1c   :  { %166 = vmatpush3.msra.mxu0 %v45_v1  ;;  %v158_v6 = vld [vmem:[%s294_s2] ss:$0 sm:$0xff]  ;;  %s148_s25 = sshll.u32 %s259_s24, 4  ;;  %s149_s25 = int_to_ptr.vmem [resolvable:$true] %s148_s25 }
  0x1d   :  { %167 = vmatprep.subr.mxu0 %v257_v0  ;;  %s227_s2 = scalar_lea.vmem %s149_s25, 128  ;;  %p232_p11 = scmp.lt.s32.totalorder %s149_s25, %s149_s25 }
  0x1e   :  { %168 = vmatpush3.msra.mxu0 %v44_v2  ;;  %p228_p10 = scmp.ne.s32.totalorder %s149_s25, %s227_s2  ;;  %p233_p12 = scmp.lt.s32.totalorder %s227_s2, %s227_s2 }
  0x1f   :  { %169 = vmatprep.subr.mxu0 %v257_v0 }
  0x20   :  { %170 = vmatpush3.msra.mxu0 %v43_v3  ;;  %p234_p13 = por %p233_p12, %p232_p11 }
  0x21   :  { %171 = vmatprep.subr.mxu0 %v257_v0 }
  0x22   :  { %172 = vmatpush3.msra.mxu0 %v42_v4  ;;  %p235_p0 = pnand %p234_p13, %p228_p10 }
  0x23   :  { %174 = vmatmul.mubr.msk.f32.vlgmr.msra.gmra.mxu0 %vm53_vm1, %v41_v5 }
  0xe3   :  { %v123_v7 = vpop.f32.mrf.mxu0 }
  0xe4   :  { %v124_v8 = vadd.f32 %v158_v6, %v123_v7 }
  0xe5   :  { %v175_v9 = vpop.f32.mrf.mxu0 }
  0xe6   :  { %v128_v10 = vmin.f32 %v124_v8, 20.0  ;;  %vm127_vm3 = vcmp.gt.f32.partialorder %v124_v8, 20.0 }
  0xe8   :  { %v129_v11 = vmul.f32 1.442695, %v128_v10 }
  0xea   :  { %183 = vpow2.f32 %v129_v11 }
  0xf7   :  { %v184_v12 = vpop.eup %183 }
  0xf8   :  { %v131_v13 = vadd.f32 1.0, %v184_v12  ;;  %v134_v14 = vmul.f32 -0.5, %v184_v12  ;;  %v137_v16 = vand.u32 2147483647, %v184_v12 }
  0xfa   :  { %185 = vlog2.f32 %v131_v13  ;;  %v135_v15 = vadd.f32 1.0, %v134_v14  ;;  %vm138_vm2 = vcmp.lt.f32.partialorder %v137_v16, 0.0004427343 }
  0xfc   :  { %v136_v19 = vmul.f32 %v184_v12, %v135_v15 }
 0x107   :  { %v186_v17 = vpop.eup %185 }
 0x108   :  { %v133_v18 = vmul.f32 0.6931472, %v186_v17 }
 0x10a   :  { %v139_v20 = vsel %vm138_vm2, %v136_v19, %v133_v18 }
 0x10b   :  { %v140_v21 = vsel %vm127_vm3, %v124_v8, %v139_v20 }
 0x10c   :  { %141 = vst [vmem:[#allocation7] sm:$0xff] %v140_v21 }
 0x10d   :  { %238 = shalt.err (!%p235_p0)
}
 0x10e   :  { %151 = dma.vmem_to_hbm [thread:$0]  %s149_s25, 128, %s295_s3, [#allocation4]  }
 0x10f   :  { %251 = dma.done.wait [#allocation4], 128  }
 0x110   :  { %252 = vsyncadd [#allocation4], 4294967168 }
 0x111   :  { %155 = vsyncpa [#allocation3], 1 }
 0x112   :  { %156 = vsyncpa [#allocation6], 1 }
 0x113   :  { %157 = vsyncpa [#allocation4], 1 }

</bundles_post_ra>
